<compile_context>
chip_gen: v7x
topology: tpu7x:2x2x1
jax: 0.10.0
libtpu: 0.0.40
codegen_flags: <defaults>
</compile_context>

<pallas_src>
import functools

import jax
import jax.numpy as jnp
from jax import lax
from jax.experimental import pallas as pl
from jax.experimental.pallas import tpu as pltpu

# ----------------------------- config (small, deterministic) -----------------
VOCAB_SIZE = 128   # vocab_size of BaseTransformer
BLOCK_SIZE = 8     # block_size of BaseTransformer (max sequence length T)
N_EMBD = 32        # hidden size of the concrete transformer block
N_HIDDEN = 4 * N_EMBD
B, T = 2, BLOCK_SIZE
_SLAB_LANES = max(N_EMBD, N_HIDDEN)          # 128

# lane offsets inside the fused (N_EMBD, 384) weight slab: [wqkv | wo | w1 | wlm]
_OFF_QKV = 0
_OFF_WO = _OFF_QKV + 3 * N_EMBD              # 96
_OFF_W1 = _OFF_WO + N_EMBD                   # 128
_OFF_WLM = _OFF_W1 + N_HIDDEN                # 256
_WSLAB_LANES = _OFF_WLM + VOCAB_SIZE         # 384


def _ln(h, gamma, beta, eps=1e-5):
    mu = jnp.mean(h, axis=-1, keepdims=True)
    var = jnp.mean((h - mu) ** 2, axis=-1, keepdims=True)
    return (h - mu) * lax.rsqrt(var + eps) * gamma + beta


def _gelu_tanh(x):
    # tanh-approx GELU (EUP-friendly inside the kernel)
    c = jnp.float32(0.7978845608028654)  # sqrt(2/pi)
    return 0.5 * x * (1.0 + jnp.tanh(c * (x + 0.044715 * x * x * x)))


# --------------------- shared in-kernel block + LM head ----------------------
def _block_logits(x_ref, wslab_ref, w2_ref, pslab_ref, *, b, t):
    """Transformer block + LM head on (b*t, C) rows. Returns (b*t, V) logits."""
    bt = b * t
    x = x_ref[...]                                    # (bt, C)

    # packed small params: rows of the (8, 128) slab (static ref slices)
    g1 = pslab_ref[0:1, 0:N_EMBD]
    be1 = pslab_ref[1:2, 0:N_EMBD]
    g2 = pslab_ref[2:3, 0:N_EMBD]
    be2 = pslab_ref[3:4, 0:N_EMBD]
    bb2 = pslab_ref[4:5, 0:N_EMBD]
    bb1 = pslab_ref[5:6, 0:N_HIDDEN]

    # ---- attention sub-block (fused QKV held in vregs, block-diag causal mask) ----
    h = _ln(x, g1, be1)
    qkv = jnp.dot(h, wslab_ref[:, _OFF_QKV:_OFF_QKV + 3 * N_EMBD],
                  preferred_element_type=jnp.float32)            # (bt, 3C), SSA value
    q = qkv[:, 0:N_EMBD]
    k = qkv[:, N_EMBD:2 * N_EMBD]
    v = qkv[:, 2 * N_EMBD:3 * N_EMBD]

    scale = jnp.float32(1.0) / jnp.sqrt(jnp.float32(N_EMBD))
    # contract last dims directly (no materialized k.T on the XLU)
    att = lax.dot_general(q, k, (((1,), (1,)), ((), ())),
                          preferred_element_type=jnp.float32) * scale   # (bt, bt)

    row = lax.broadcasted_iota(jnp.int32, (bt, bt), 0)
    col = lax.broadcasted_iota(jnp.int32, (bt, bt), 1)
    if t & (t - 1) == 0:
        shift = t.bit_length() - 1                   # t static power of two
        same_batch = (row >> shift) == (col >> shift)
    else:
        same_batch = (row // t) == (col // t)        # general fallback
    keep = same_batch & (col <= row)                 # same batch AND causal
    att = jnp.where(keep, att, jnp.float32(-1e30))

    amax = jnp.max(att, axis=-1, keepdims=True)
    p = jnp.exp(att - amax)                          # masked entries -> exactly 0
    p = p * pl.reciprocal(jnp.sum(p, axis=-1, keepdims=True), approx=True)
    y = jnp.dot(p, v, preferred_element_type=jnp.float32)               # (bt, C)
    x = x + jnp.dot(y, wslab_ref[:, _OFF_WO:_OFF_WO + N_EMBD],
                    preferred_element_type=jnp.float32)

    # ---- MLP sub-block ----
    h2 = _ln(x, g2, be2)
    m = jnp.dot(h2, wslab_ref[:, _OFF_W1:_OFF_W1 + N_HIDDEN],
                preferred_element_type=jnp.float32) + bb1
    m = _gelu_tanh(m)
    x = x + jnp.dot(m, w2_ref[...], preferred_element_type=jnp.float32) + bb2

    # ---- LM head ----
    return jnp.dot(x, wslab_ref[:, _OFF_WLM:_OFF_WLM + VOCAB_SIZE],
                   preferred_element_type=jnp.float32)           # (bt, V)


# --------------------------- fused Pallas kernels -----------------------------
def _fused_kernel_with_loss(x_ref, wslab_ref, w2_ref, pslab_ref, tgt_ref,
                            logits_ref, loss_ref, *, b, t):
    bt = b * t
    logits = _block_logits(x_ref, wslab_ref, w2_ref, pslab_ref, b=b, t=t)
    logits_ref[...] = logits

    # fused cross-entropy: reduction done in VMEM/vregs, scalar result to SMEM
    m = jnp.max(logits, axis=-1, keepdims=True)
    lse = m + jnp.log(jnp.sum(jnp.exp(logits - m), axis=-1, keepdims=True))
    vid = lax.broadcasted_iota(jnp.int32, (bt, VOCAB_SIZE), 1)
    sel = jnp.sum(jnp.where(vid == tgt_ref[...], logits, jnp.float32(0.0)),
                  axis=-1, keepdims=True)
    loss_ref[0, 0] = jnp.mean(lse - sel)


def _fused_kernel_logits_only(x_ref, wslab_ref, w2_ref, pslab_ref, logits_ref,
                              *, b, t):
    logits_ref[...] = _block_logits(x_ref, wslab_ref, w2_ref, pslab_ref, b=b, t=t)


# ------------------------------ wrapper / "module" ---------------------------
def init_params(key):
    ks = jax.random.split(key, 10)
    s = 0.02
    p = {
        "wte": jax.random.normal(ks[0], (VOCAB_SIZE, N_EMBD), jnp.float32) * s,
        "wpe": jax.random.normal(ks[1], (BLOCK_SIZE, N_EMBD), jnp.float32) * s,
        "ln1_g": jnp.ones((1, N_EMBD), jnp.float32),
        "ln1_b": jnp.zeros((1, N_EMBD), jnp.float32),
        "wq": jax.random.normal(ks[2], (N_EMBD, N_EMBD), jnp.float32) * s,
        "wk": jax.random.normal(ks[3], (N_EMBD, N_EMBD), jnp.float32) * s,
        "wv": jax.random.normal(ks[4], (N_EMBD, N_EMBD), jnp.float32) * s,
        "wo": jax.random.normal(ks[5], (N_EMBD, N_EMBD), jnp.float32) * s,
        "ln2_g": jnp.ones((1, N_EMBD), jnp.float32),
        "ln2_b": jnp.zeros((1, N_EMBD), jnp.float32),
        "w1": jax.random.normal(ks[6], (N_EMBD, N_HIDDEN), jnp.float32) * s,
        "b1": jnp.zeros((1, N_HIDDEN), jnp.float32),
        "w2": jax.random.normal(ks[7], (N_HIDDEN, N_EMBD), jnp.float32) * s,
        "b2": jnp.zeros((1, N_EMBD), jnp.float32),
        "wlm": jax.random.normal(ks[8], (N_EMBD, VOCAB_SIZE), jnp.float32) * s,
    }
    return p


def pack_params(params):
    """One-time packing of kernel inputs (hoisted out of forward()).

    Adds:
      wslab : (N_EMBD, 384) = [wq|wk|wv | wo | w1 | wlm]  (one lane-dense DMA)
      pslab : (8, 128)      = LN gains/biases + MLP biases, one row each
    """
    wslab = jnp.concatenate(
        [params["wq"], params["wk"], params["wv"], params["wo"],
         params["w1"], params["wlm"]], axis=1)
    assert wslab.shape == (N_EMBD, _WSLAB_LANES)

    def row(v):
        v = v.reshape(1, -1)
        return jnp.pad(v, ((0, 0), (0, _SLAB_LANES - v.shape[1])))
    pslab = jnp.concatenate(
        [row(params["ln1_g"]), row(params["ln1_b"]),
         row(params["ln2_g"]), row(params["ln2_b"]),
         row(params["b2"]), row(params["b1"])], axis=0)          # (6, 128)
    pslab = jnp.pad(pslab, ((0, 8 - pslab.shape[0]), (0, 0)))    # (8, 128)

    out = dict(params)
    out["wslab"] = wslab
    out["pslab"] = pslab
    return out


def forward(params, idx, targets=None):
    """forward(idx (B,T) int32, targets (B,T) int32 or None) -> (logits, loss)

    `params` must be the packed dict from pack_params()."""
    b, t = idx.shape
    assert t <= BLOCK_SIZE
    bt = b * t

    # glue: embedding lookup + positional embedding, flattened to (B*T, C)
    x = jnp.take(params["wte"], idx, axis=0) + params["wpe"][:t][None, :, :]
    x = x.reshape(bt, N_EMBD)

    vmem = lambda: pl.BlockSpec(memory_space=pltpu.MemorySpace.VMEM)
    smem = lambda: pl.BlockSpec(memory_space=pltpu.MemorySpace.SMEM)
    ins = [x, params["wslab"], params["w2"], params["pslab"]]

    if targets is None:
        logits_flat = pl.pallas_call(
            functools.partial(_fused_kernel_logits_only, b=b, t=t),
            out_shape=jax.ShapeDtypeStruct((bt, VOCAB_SIZE), jnp.float32),
            in_specs=[vmem() for _ in ins],
            out_specs=vmem(),
        )(*ins)
        return logits_flat.reshape(b, t, VOCAB_SIZE), None

    tgt = targets.reshape(bt, 1).astype(jnp.int32)
    logits_flat, loss = pl.pallas_call(
        functools.partial(_fused_kernel_with_loss, b=b, t=t),
        out_shape=(jax.ShapeDtypeStruct((bt, VOCAB_SIZE), jnp.float32),
                   jax.ShapeDtypeStruct((1, 1), jnp.float32)),
        in_specs=[vmem() for _ in ins] + [vmem()],
        out_specs=(vmem(), smem()),          # scalar loss lives in SMEM
    )(*ins, tgt)
    return logits_flat.reshape(b, t, VOCAB_SIZE), loss[0, 0]


# ------------------------------- pure-JAX reference --------------------------
def forward_ref(params, idx, targets):
    b, t = idx.shape
    x = jnp.take(params["wte"], idx, axis=0) + params["wpe"][:t][None, :, :]
    h = _ln(x, params["ln1_g"][0], params["ln1_b"][0])
    q = h @ params["wq"]; k = h @ params["wk"]; v = h @ params["wv"]
    att = jnp.einsum("btc,bsc->bts", q, k) / jnp.sqrt(jnp.float32(N_EMBD))
    mask = jnp.tril(jnp.ones((t, t), bool))
    att = jnp.where(mask[None], att, -1e30)
    att = jax.nn.softmax(att, axis=-1)
    y = jnp.einsum("bts,bsc->btc", att, v) @ params["wo"]
    x = x + y
    h2 = _ln(x, params["ln2_g"][0], params["ln2_b"][0])
    m = _gelu_tanh(h2 @ params["w1"] + params["b1"][0]) @ params["w2"] + params["b2"][0]
    x = x + m
    logits = x @ params["wlm"]
    lse = jax.nn.logsumexp(logits, axis=-1)
    tgt = jnp.take_along_axis(logits, targets[..., None], axis=-1)[..., 0]
    return logits, jnp.mean(lse - tgt)


# TODO(synk): autoregressive `generate` (sampling loop, top-k) and
# save/load_pretrained / model registry are host-side control flow with no
# clean single-kernel Pallas equivalent; omitted.

if __name__ == "__main__":
    key = jax.random.PRNGKey(0)
    pkey, ikey, tkey = jax.random.split(key, 3)
    params = pack_params(init_params(pkey))   # fuse/pack weights ONCE at init

    idx = jax.random.randint(ikey, (B, T), 0, VOCAB_SIZE, dtype=jnp.int32)
    targets = jax.random.randint(tkey, (B, T), 0, VOCAB_SIZE, dtype=jnp.int32)

    fwd = jax.jit(forward)
    logits, loss = fwd(params, idx, targets)
    logits = jax.block_until_ready(logits)
    loss = jax.block_until_ready(loss)

    # also exercise the targets=None path of the forward contract
    logits_only, no_loss = forward(params, idx, None)
    logits_only = jax.block_until_ready(logits_only)
    assert no_loss is None

    ref_logits, ref_loss = forward_ref(params, idx, targets)
    assert logits.shape == (B, T, VOCAB_SIZE)
    assert jnp.allclose(logits, ref_logits, atol=1e-4, rtol=1e-4)
    assert jnp.allclose(logits_only, ref_logits, atol=1e-4, rtol=1e-4)
    assert jnp.allclose(loss, ref_loss, atol=1e-4, rtol=1e-4)

    print("KERNEL_OK")
</pallas_src>

<mosaic_0001>
module attributes {stable_mosaic.version = 11 : i64} {
  func.func @_fused_kernel_with_loss(%arg0: memref<16x32xf32, #tpu.memory_space<vmem>>, %arg1: memref<32x384xf32, #tpu.memory_space<vmem>>, %arg2: memref<128x32xf32, #tpu.memory_space<vmem>>, %arg3: memref<8x128xf32, #tpu.memory_space<vmem>>, %arg4: memref<16x1xi32, #tpu.memory_space<vmem>>, %arg5: memref<16x128xf32, #tpu.memory_space<vmem>>, %arg6: memref<1x1xf32, #tpu.memory_space<smem>>) attributes {dimension_semantics = [], scalar_prefetch = 0 : i64, scratch_operands = 0 : i64, tpu.core_type = #tpu.core_type<tc>} {
    %c0 = arith.constant 0 : index
    %c0_0 = arith.constant 0 : index
    %0 = vector.load %arg0[%c0, %c0_0] : memref<16x32xf32, #tpu.memory_space<vmem>>, vector<16x32xf32>
    %c0_1 = arith.constant 0 : index
    %c0_2 = arith.constant 0 : index
    %1 = vector.load %arg3[%c0_1, %c0_2] : memref<8x128xf32, #tpu.memory_space<vmem>>, vector<1x32xf32>
    %c1 = arith.constant 1 : index
    %c0_3 = arith.constant 0 : index
    %2 = vector.load %arg3[%c1, %c0_3] : memref<8x128xf32, #tpu.memory_space<vmem>>, vector<1x32xf32>
    %c2 = arith.constant 2 : index
    %c0_4 = arith.constant 0 : index
    %3 = vector.load %arg3[%c2, %c0_4] : memref<8x128xf32, #tpu.memory_space<vmem>>, vector<1x32xf32>
    %c3 = arith.constant 3 : index
    %c0_5 = arith.constant 0 : index
    %4 = vector.load %arg3[%c3, %c0_5] : memref<8x128xf32, #tpu.memory_space<vmem>>, vector<1x32xf32>
    %c4 = arith.constant 4 : index
    %c0_6 = arith.constant 0 : index
    %5 = vector.load %arg3[%c4, %c0_6] : memref<8x128xf32, #tpu.memory_space<vmem>>, vector<1x32xf32>
    %c5 = arith.constant 5 : index
    %c0_7 = arith.constant 0 : index
    %6 = vector.load %arg3[%c5, %c0_7] : memref<8x128xf32, #tpu.memory_space<vmem>>, vector<1x128xf32>
    %cst = arith.constant dense<0.000000e+00> : vector<16xf32>
    %7 = vector.multi_reduction <add>, %0, %cst [1] : vector<16x32xf32> to vector<16xf32>
    %8 = vector.shape_cast %7 : vector<16xf32> to vector<16x1xf32>
    %cst_8 = arith.constant 3.200000e+01 : f32
    %9 = vector.broadcast %cst_8 : f32 to vector<16x1xf32>
    %10 = arith.divf %8, %9 : vector<16x1xf32>
    %11 = vector.broadcast %10 : vector<16x1xf32> to vector<16x32xf32>
    %12 = arith.subf %0, %11 : vector<16x32xf32>
    %13 = arith.mulf %12, %12 : vector<16x32xf32>
    %cst_9 = arith.constant dense<0.000000e+00> : vector<16xf32>
    %14 = vector.multi_reduction <add>, %13, %cst_9 [1] : vector<16x32xf32> to vector<16xf32>
    %15 = vector.shape_cast %14 : vector<16xf32> to vector<16x1xf32>
    %cst_10 = arith.constant 3.200000e+01 : f32
    %16 = vector.broadcast %cst_10 : f32 to vector<16x1xf32>
    %17 = arith.divf %15, %16 : vector<16x1xf32>
    %18 = vector.broadcast %10 : vector<16x1xf32> to vector<16x32xf32>
    %19 = arith.subf %0, %18 : vector<16x32xf32>
    %cst_11 = arith.constant 9.99999974E-6 : f32
    %20 = vector.broadcast %cst_11 : f32 to vector<16x1xf32>
    %21 = arith.addf %17, %20 : vector<16x1xf32>
    %22 = math.rsqrt %21 : vector<16x1xf32>
    %23 = vector.broadcast %22 : vector<16x1xf32> to vector<16x32xf32>
    %24 = arith.mulf %19, %23 : vector<16x32xf32>
    %25 = vector.broadcast %1 : vector<1x32xf32> to vector<16x32xf32>
    %26 = arith.mulf %24, %25 : vector<16x32xf32>
    %27 = vector.broadcast %2 : vector<1x32xf32> to vector<16x32xf32>
    %28 = arith.addf %26, %27 : vector<16x32xf32>
    %c0_12 = arith.constant 0 : index
    %c0_13 = arith.constant 0 : index
    %29 = vector.load %arg1[%c0_12, %c0_13] : memref<32x384xf32, #tpu.memory_space<vmem>>, vector<32x96xf32>
    %cst_14 = arith.constant dense<0.000000e+00> : vector<16x96xf32>
    %30 = tpu.matmul %28, %29, %cst_14 {dimension_numbers = #tpu.dot_dimension_numbers<[1], [0], [0], [1], [0, 0, 1, 1], [], []>} : vector<16x32xf32>, vector<32x96xf32>, vector<16x96xf32> -> vector<16x96xf32>
    %31 = vector.extract_strided_slice %30 {offsets = [0, 0], sizes = [16, 32], strides = [1, 1]} : vector<16x96xf32> to vector<16x32xf32>
    %32 = vector.extract_strided_slice %30 {offsets = [0, 32], sizes = [16, 32], strides = [1, 1]} : vector<16x96xf32> to vector<16x32xf32>
    %33 = vector.extract_strided_slice %30 {offsets = [0, 64], sizes = [16, 32], strides = [1, 1]} : vector<16x96xf32> to vector<16x32xf32>
    %cst_15 = arith.constant 3.200000e+01 : f32
    %34 = math.sqrt %cst_15 : f32
    %cst_16 = arith.constant 1.000000e+00 : f32
    %35 = arith.divf %cst_16, %34 : f32
    %cst_17 = arith.constant dense<0.000000e+00> : vector<16x16xf32>
    %36 = tpu.matmul %31, %32, %cst_17 {dimension_numbers = #tpu.dot_dimension_numbers<[1], [1], [0], [0], [0, 0, 1, 0], [], []>} : vector<16x32xf32>, vector<16x32xf32>, vector<16x16xf32> -> vector<16x16xf32>
    %37 = vector.broadcast %35 : f32 to vector<16x16xf32>
    %38 = arith.mulf %36, %37 : vector<16x16xf32>
    %39 = tpu.iota {dimensions = array<i32: 0>} : vector<16x16xi32>
    %40 = tpu.iota {dimensions = array<i32: 1>} : vector<16x16xi32>
    %c3_i32 = arith.constant 3 : i32
    %41 = vector.broadcast %c3_i32 : i32 to vector<16x16xi32>
    %42 = arith.shrsi %39, %41 : vector<16x16xi32>
    %c3_i32_18 = arith.constant 3 : i32
    %43 = vector.broadcast %c3_i32_18 : i32 to vector<16x16xi32>
    %44 = arith.shrsi %40, %43 : vector<16x16xi32>
    %45 = arith.cmpi eq, %42, %44 : vector<16x16xi32>
    %46 = arith.cmpi sle, %40, %39 : vector<16x16xi32>
    %47 = arith.andi %45, %46 : vector<16x16xi1>
    %cst_19 = arith.constant -1.000000e+30 : f32
    %48 = vector.broadcast %cst_19 : f32 to vector<16x16xf32>
    %49 = arith.select %47, %38, %48 : vector<16x16xi1>, vector<16x16xf32>
    %cst_20 = arith.constant dense<0xFF800000> : vector<16xf32>
    %50 = vector.multi_reduction <maximumf>, %49, %cst_20 [1] : vector<16x16xf32> to vector<16xf32>
    %51 = vector.shape_cast %50 : vector<16xf32> to vector<16x1xf32>
    %52 = vector.broadcast %51 : vector<16x1xf32> to vector<16x16xf32>
    %53 = arith.subf %49, %52 : vector<16x16xf32>
    %54 = math.exp %53 : vector<16x16xf32>
    %cst_21 = arith.constant dense<0.000000e+00> : vector<16xf32>
    %55 = vector.multi_reduction <add>, %54, %cst_21 [1] : vector<16x16xf32> to vector<16xf32>
    %56 = vector.shape_cast %55 : vector<16xf32> to vector<16x1xf32>
    %57 = tpu.reciprocal %56 {approx = true} : vector<16x1xf32> -> vector<16x1xf32>
    %58 = vector.broadcast %57 : vector<16x1xf32> to vector<16x16xf32>
    %59 = arith.mulf %54, %58 : vector<16x16xf32>
    %cst_22 = arith.constant dense<0.000000e+00> : vector<16x32xf32>
    %60 = tpu.matmul %59, %33, %cst_22 {dimension_numbers = #tpu.dot_dimension_numbers<[1], [0], [0], [1], [0, 0, 1, 1], [], []>} : vector<16x16xf32>, vector<16x32xf32>, vector<16x32xf32> -> vector<16x32xf32>
    %c0_23 = arith.constant 0 : index
    %c96 = arith.constant 96 : index
    %61 = vector.load %arg1[%c0_23, %c96] : memref<32x384xf32, #tpu.memory_space<vmem>>, vector<32x32xf32>
    %cst_24 = arith.constant dense<0.000000e+00> : vector<16x32xf32>
    %62 = tpu.matmul %60, %61, %cst_24 {dimension_numbers = #tpu.dot_dimension_numbers<[1], [0], [0], [1], [0, 0, 1, 1], [], []>} : vector<16x32xf32>, vector<32x32xf32>, vector<16x32xf32> -> vector<16x32xf32>
    %63 = arith.addf %0, %62 : vector<16x32xf32>
    %cst_25 = arith.constant dense<0.000000e+00> : vector<16xf32>
    %64 = vector.multi_reduction <add>, %63, %cst_25 [1] : vector<16x32xf32> to vector<16xf32>
    %65 = vector.shape_cast %64 : vector<16xf32> to vector<16x1xf32>
    %cst_26 = arith.constant 3.200000e+01 : f32
    %66 = vector.broadcast %cst_26 : f32 to vector<16x1xf32>
    %67 = arith.divf %65, %66 : vector<16x1xf32>
    %68 = vector.broadcast %67 : vector<16x1xf32> to vector<16x32xf32>
    %69 = arith.subf %63, %68 : vector<16x32xf32>
    %70 = arith.mulf %69, %69 : vector<16x32xf32>
    %cst_27 = arith.constant dense<0.000000e+00> : vector<16xf32>
    %71 = vector.multi_reduction <add>, %70, %cst_27 [1] : vector<16x32xf32> to vector<16xf32>
    %72 = vector.shape_cast %71 : vector<16xf32> to vector<16x1xf32>
    %cst_28 = arith.constant 3.200000e+01 : f32
    %73 = vector.broadcast %cst_28 : f32 to vector<16x1xf32>
    %74 = arith.divf %72, %73 : vector<16x1xf32>
    %75 = vector.broadcast %67 : vector<16x1xf32> to vector<16x32xf32>
    %76 = arith.subf %63, %75 : vector<16x32xf32>
    %cst_29 = arith.constant 9.99999974E-6 : f32
    %77 = vector.broadcast %cst_29 : f32 to vector<16x1xf32>
    %78 = arith.addf %74, %77 : vector<16x1xf32>
    %79 = math.rsqrt %78 : vector<16x1xf32>
    %80 = vector.broadcast %79 : vector<16x1xf32> to vector<16x32xf32>
    %81 = arith.mulf %76, %80 : vector<16x32xf32>
    %82 = vector.broadcast %3 : vector<1x32xf32> to vector<16x32xf32>
    %83 = arith.mulf %81, %82 : vector<16x32xf32>
    %84 = vector.broadcast %4 : vector<1x32xf32> to vector<16x32xf32>
    %85 = arith.addf %83, %84 : vector<16x32xf32>
    %c0_30 = arith.constant 0 : index
    %c128 = arith.constant 128 : index
    %86 = vector.load %arg1[%c0_30, %c128] : memref<32x384xf32, #tpu.memory_space<vmem>>, vector<32x128xf32>
    %cst_31 = arith.constant dense<0.000000e+00> : vector<16x128xf32>
    %87 = tpu.matmul %85, %86, %cst_31 {dimension_numbers = #tpu.dot_dimension_numbers<[1], [0], [0], [1], [0, 0, 1, 1], [], []>} : vector<16x32xf32>, vector<32x128xf32>, vector<16x128xf32> -> vector<16x128xf32>
    %88 = vector.broadcast %6 : vector<1x128xf32> to vector<16x128xf32>
    %89 = arith.addf %87, %88 : vector<16x128xf32>
    %cst_32 = arith.constant 5.000000e-01 : f32
    %90 = vector.broadcast %cst_32 : f32 to vector<16x128xf32>
    %91 = arith.mulf %90, %89 : vector<16x128xf32>
    %cst_33 = arith.constant 4.471500e-02 : f32
    %92 = vector.broadcast %cst_33 : f32 to vector<16x128xf32>
    %93 = arith.mulf %92, %89 : vector<16x128xf32>
    %94 = arith.mulf %93, %89 : vector<16x128xf32>
    %95 = arith.mulf %94, %89 : vector<16x128xf32>
    %96 = arith.addf %89, %95 : vector<16x128xf32>
    %cst_34 = arith.constant 0.797884583 : f32
    %97 = vector.broadcast %cst_34 : f32 to vector<16x128xf32>
    %98 = arith.mulf %97, %96 : vector<16x128xf32>
    %99 = math.tanh %98 : vector<16x128xf32>
    %cst_35 = arith.constant 1.000000e+00 : f32
    %100 = vector.broadcast %cst_35 : f32 to vector<16x128xf32>
    %101 = arith.addf %100, %99 : vector<16x128xf32>
    %102 = arith.mulf %91, %101 : vector<16x128xf32>
    %c0_36 = arith.constant 0 : index
    %c0_37 = arith.constant 0 : index
    %103 = vector.load %arg2[%c0_36, %c0_37] : memref<128x32xf32, #tpu.memory_space<vmem>>, vector<128x32xf32>
    %cst_38 = arith.constant dense<0.000000e+00> : vector<16x32xf32>
    %104 = tpu.matmul %102, %103, %cst_38 {dimension_numbers = #tpu.dot_dimension_numbers<[1], [0], [0], [1], [0, 0, 1, 1], [], []>} : vector<16x128xf32>, vector<128x32xf32>, vector<16x32xf32> -> vector<16x32xf32>
    %105 = arith.addf %63, %104 : vector<16x32xf32>
    %106 = vector.broadcast %5 : vector<1x32xf32> to vector<16x32xf32>
    %107 = arith.addf %105, %106 : vector<16x32xf32>
    %c0_39 = arith.constant 0 : index
    %c256 = arith.constant 256 : index
    %108 = vector.load %arg1[%c0_39, %c256] : memref<32x384xf32, #tpu.memory_space<vmem>>, vector<32x128xf32>
    %cst_40 = arith.constant dense<0.000000e+00> : vector<16x128xf32>
    %109 = tpu.matmul %107, %108, %cst_40 {dimension_numbers = #tpu.dot_dimension_numbers<[1], [0], [0], [1], [0, 0, 1, 1], [], []>} : vector<16x32xf32>, vector<32x128xf32>, vector<16x128xf32> -> vector<16x128xf32>
    %c0_41 = arith.constant 0 : index
    %c0_42 = arith.constant 0 : index
    %110 = vector.load %arg5[%c0_41, %c0_42] : memref<16x128xf32, #tpu.memory_space<vmem>>, vector<16x128xf32>
    tpu.vector_store %arg5[%c0_41, %c0_42], %109 {strides = array<i32>} : memref<16x128xf32, #tpu.memory_space<vmem>>, vector<16x128xf32>,
    %cst_43 = arith.constant dense<0xFF800000> : vector<16xf32>
    %111 = vector.multi_reduction <maximumf>, %109, %cst_43 [1] : vector<16x128xf32> to vector<16xf32>
    %112 = vector.shape_cast %111 : vector<16xf32> to vector<16x1xf32>
    %113 = vector.broadcast %112 : vector<16x1xf32> to vector<16x128xf32>
    %114 = arith.subf %109, %113 : vector<16x128xf32>
    %115 = math.exp %114 : vector<16x128xf32>
    %cst_44 = arith.constant dense<0.000000e+00> : vector<16xf32>
    %116 = vector.multi_reduction <add>, %115, %cst_44 [1] : vector<16x128xf32> to vector<16xf32>
    %117 = vector.shape_cast %116 : vector<16xf32> to vector<16x1xf32>
    %118 = math.log %117 : vector<16x1xf32>
    %119 = arith.addf %112, %118 : vector<16x1xf32>
    %120 = tpu.iota {dimensions = array<i32: 1>} : vector<16x128xi32>
    %c0_45 = arith.constant 0 : index
    %c0_46 = arith.constant 0 : index
    %121 = vector.load %arg4[%c0_45, %c0_46] : memref<16x1xi32, #tpu.memory_space<vmem>>, vector<16x1xi32>
    %122 = vector.broadcast %121 : vector<16x1xi32> to vector<16x128xi32>
    %123 = arith.cmpi eq, %120, %122 : vector<16x128xi32>
    %cst_47 = arith.constant 0.000000e+00 : f32
    %124 = vector.broadcast %cst_47 : f32 to vector<16x128xf32>
    %125 = arith.select %123, %109, %124 : vector<16x128xi1>, vector<16x128xf32>
    %cst_48 = arith.constant dense<0.000000e+00> : vector<16xf32>
    %126 = vector.multi_reduction <add>, %125, %cst_48 [1] : vector<16x128xf32> to vector<16xf32>
    %127 = vector.shape_cast %126 : vector<16xf32> to vector<16x1xf32>
    %128 = arith.subf %119, %127 : vector<16x1xf32>
    %129 = vector.shape_cast %128 : vector<16x1xf32> to vector<1x16x1xf32>
    %cst_49 = arith.constant dense<0.000000e+00> : vector<1xf32>
    %130 = vector.multi_reduction <add>, %129, %cst_49 [1, 2] : vector<1x16x1xf32> to vector<1xf32>
    %131 = vector.shape_cast %130 : vector<1xf32> to vector<1x1x1xf32>
    %132 = vector.extract %131[0, 0, 0] : f32 from vector<1x1x1xf32>
    %cst_50 = arith.constant 1.600000e+01 : f32
    %133 = arith.divf %132, %cst_50 : f32
    %c0_51 = arith.constant 0 : index
    %c0_52 = arith.constant 0 : index
    %134 = memref.load %arg6[%c0_51, %c0_52] : memref<1x1xf32, #tpu.memory_space<smem>>
    memref.store %133, %arg6[%c0_51, %c0_52] : memref<1x1xf32, #tpu.memory_space<smem>>
    return
  }
}

</mosaic_0001>

<bundles_post_ra>
// kernel: forward.1
= control target key start
LH: loop header
LB: loop body
LE: loop exit
PB: predicated region body
PF: predicated region fallthrough
CT: control target
= control target key end

     0   :  { %12 = vsyncpa [#allocation3], 0  ;;  %vm32_vm0 = vcmask 261120   ;;  %s1475_s0 = inlined_call_operand.vmem [shape: f32[16,32], index: 0, kind: input, shape index: {}]   ;;  %s1476_s1 = inlined_call_operand.vmem [shape: f32[32,384], index: 1, kind: input, shape index: {}]   ;;  %s1477_s2 = inlined_call_operand.vmem [shape: f32[128,32], index: 2, kind: input, shape index: {}]   ;;  %s1478_s3 = inlined_call_operand.vmem [shape: f32[8,128], index: 3, kind: input, shape index: {}]   ;;  %s1479_s4 = inlined_call_operand.vmem [shape: s32[16,1], index: 4, kind: input, shape index: {}]   ;;  %s1480_s5 = inlined_call_operand.hbm [shape: f32[16,128], index: 5, kind: output, shape index: {0}]   ;;  %s1481_s6 = inlined_call_operand.hbm [shape: f32[1,1], index: 6, kind: output, shape index: {1}]  }
   0x1   :  { %v1268_v0 = vld [vmem:[%s1475_s0] sm:$0xff]  ;;  %v1273_v1 = vld [vmem:[%s1475_s0 + $0x8] sm:$0xff] }
   0x2   :  { %13 = vsyncpa [#allocation4], 0  ;;  %v33_v2 = vsel %vm32_vm0, %v1268_v0, 0.0  ;;  %v36_v3 = vsel %vm32_vm0, %v1273_v1, 0.0  ;;  %v1286_v14 = vld [vmem:[%s1476_s1] sm:$0xff]  ;;  %v1291_v15 = vld [vmem:[%s1476_s1 + $0x18] sm:$0xff]  ;;  %v248_v44 = vlaneseq }
   0x3   :  { %34 = vadd.xlane.f32.xlu0 %v33_v2  ;;  %v1296_v16 = vld [vmem:[%s1476_s1 + $0x30] sm:$0xff]  ;;  %v1146_v17 = vpack.i.bf16 %v1291_v15, %v1286_v14  ;;  %v1052_v18 = vpack.c.bf16 %v1291_v15, %v1286_v14  ;;  %v1305_v19 = vld [vmem:[%s1476_s1 + $0x48] sm:$0xff]  ;;  %v889_v28 = vld [vmem:[%s1478_s3] ss:$0 sm:$0xff]  ;;  %s1222_s12 = smov 96   ;;  %vm264_vm7 = vcmask 130048  }
   0x4   :  { %v1056_v20 = vpack.c.bf16 %v1305_v19, %v1296_v16  ;;  %v890_v30 = vld [vmem:[%s1478_s3 + $0x1] ss:$0 sm:$0xff]  ;;  %vm1061_vm1 = vmpackc.low %vm32_vm0, %vm32_vm0  ;;  %v249_v45 = vshrl.u32 %v248_v44, 7  ;;  %v1321_v46 = vand.u32 127, %v248_v44  ;;  %s1223_s13 = smov 64   ;;  %s1224_s14 = smov 32  }
   0x5   :  { %1053 = vmatprep.subr.bf16.mxu0 %v1052_v18  ;;  %vm842_vm11 = vcmask 7168  }
   0x6   :  { %1055 = vmatpush3.bf16.msra.mxu0 %v1052_v18  ;;  %v250_v47 = vadd.s32 8, %v249_v45  ;;  %v253_v48 = vshra.s32 %v249_v45, 3  ;;  %v255_v49 = vshra.s32 %v1321_v46, 3  ;;  %vm258_vm3 = vcmp.le.s32.totalorder %v1321_v46, %v249_v45  ;;  %v513_v45 = vld [vmem:[%s1476_s1 + $0x38] sm:$0xff] }
   0x7   :  { %37 = vadd.xlane.f32.xlu0 %v36_v3  ;;  %1057 = vmatprep.subr.bf16.mxu0 %v1056_v20 }
   0x8   :  { %v254_v50 = vshra.s32 %v250_v47, 3  ;;  %vm256_vm2 = vcmp.eq.s32.totalorder %v253_v48, %v255_v49  ;;  %vm259_vm5 = vcmp.le.s32.totalorder %v1321_v46, %v250_v47  ;;  %v514_v47 = vld [vmem:[%s1476_s1 + $0x50] sm:$0xff] }
   0x9   :  { %vm260_vm6 = vmand %vm256_vm2, %vm258_vm3  ;;  %v1082_v48 = vpack.c.bf16 %v514_v47, %v513_v45 }
   0xa   :  { %1059 = vmatpush3.bf16.msra.mxu0 %v1056_v20  ;;  %vm257_vm4 = vcmp.eq.s32.totalorder %v254_v50, %v255_v49  ;;  %v618_v49 = vld [vmem:[%s1477_s2] sm:$0xff]  ;;  %v619_v50 = vld [vmem:[%s1477_s2 + $0x8] sm:$0xff] }
   0xb   :  { %vm261_vm8 = vmand %vm257_vm4, %vm259_vm5 }
  0x90   :  { %v35_v4 = vpop.xlane.xlu0 %34 }
  0x91   :  { %v40_v5 = vmul.f32 0.03125, %v35_v4 }
  0x93   :  { %v42_v6 = vsub.f32 %v1268_v0, %v40_v5 }
  0x94   :  { %v38_v7 = vpop.xlane.xlu0 %37 }
  0x95   :  { %v41_v8 = vmul.f32 0.03125, %v38_v7  ;;  %v44_v9 = vmul.f32 %v42_v6, %v42_v6  ;;  %v1151_v7 = vpack.i.bf16 %v1305_v19, %v1296_v16 }
  0x97   :  { %v43_v10 = vsub.f32 %v1273_v1, %v41_v8  ;;  %v46_v11 = vsel %vm32_vm0, %v44_v9, 0.0 }
  0x98   :  { %47 = vadd.xlane.f32.xlu1 %v46_v11 }
  0x99   :  { %v45_v12 = vmul.f32 %v43_v10, %v43_v10 }
  0x9b   :  { %v49_v13 = vsel %vm32_vm0, %v45_v12, 0.0 }
  0x9c   :  { %50 = vadd.xlane.f32.xlu1 %v49_v13 }
 0x125   :  { %v48_v21 = vpop.xlane.xlu1 %47 }
 0x126   :  { %v52_v22 = vmul.f32 0.03125, %v48_v21 }
 0x128   :  { %v54_v23 = vadd.f32 1e-05, %v52_v22 }
 0x129   :  { %v51_v24 = vpop.xlane.xlu1 %50 }
 0x12a   :  { %1158 = vrsqrt.f32 %v54_v23  ;;  %v53_v25 = vmul.f32 0.03125, %v51_v24 }
 0x12c   :  { %v55_v26 = vadd.f32 1e-05, %v53_v25 }
 0x12e   :  { %1160 = vrsqrt.f32 %v55_v26 }
 0x134   :  { %v1159_v27 = vpop.eup %1158 }
 0x135   :  { %v58_v29 = vmul.f32 %v1159_v27, %v42_v6 }
 0x137   :  { %v64_v31 = vmul.f32 %v889_v28, %v58_v29 }
 0x138   :  { %v1161_v32 = vpop.eup %1160 }
 0x139   :  { %v59_v33 = vmul.f32 %v1161_v32, %v43_v10  ;;  %v70_v34 = vadd.f32 %v890_v30, %v64_v31 }
 0x13b   :  { %v65_v35 = vmul.f32 %v889_v28, %v59_v33  ;;  %967 = vmatprep.mubr.msk.f32.mxu0 %vm32_vm0, %v70_v34 }
 0x13d   :  { %v71_v36 = vadd.f32 %v890_v30, %v65_v35 }
 0x13f   :  { %968 = vmatmul.mubr.msk.f32.vlgmr.msra.gmra.mrb[0].mxu0 %vm32_vm0, %v71_v36 }
 0x212   :  { %v969_v37 = vpop.f32.mrb[0].mxu0 }
 0x213   :  { %v148_v38 = vpop.f32.mrb[1].mxu0 }
 0x214   :  { %v1141_v39 = vpack.i.bf16 %v969_v37, %v148_v38  ;;  %974 = vmatprep.mubr.msk.f32.mxu0 %vm32_vm0, %v148_v38 }
 0x216   :  { %1137 = vrot.lane.b32.xlu0 %v1141_v39, %s1222_s12 }
 0x21a   :  { %1147 = vrot.lane.b32.xlu0 %v1146_v17, %s1224_s14 }
 0x21e   :  { %1152 = vrot.lane.b32.xlu0 %v1151_v7, %s1224_s14  ;;  %v621_v7 = vld [vmem:[%s1477_s2 + $0x18] sm:$0xff] }
 0x288   :  { %v1138_v40 = vpop.permute.xlu0 %1137 }
 0x289   :  { %v1140_v41 = vunpack.i.h.bf16 %v1138_v40  ;;  %v1139_v42 = vunpack.i.l.bf16 %v1138_v40 }
 0x28b   :  { %v1060_v43 = vpack.c.bf16 %v1140_v41, %v1139_v42  ;;  %v511_v42 = vld [vmem:[%s1476_s1 + $0x8] sm:$0xff] }
 0x28c   :  { %v1148_v10 = vpop.permute.xlu0 %1147 }
 0x28d   :  { %1062 = vmatprep.subr.msk.bf16.mxu0 %vm1061_vm1, %v1060_v43  ;;  %v1150_v11 = vunpack.i.h.bf16 %v1148_v10  ;;  %v1149_v12 = vunpack.i.l.bf16 %v1148_v10  ;;  %v623_v10 = vld [vmem:[%s1477_s2 + $0x28] sm:$0xff] }
 0x28e   :  { %1065 = vmatpush3.bf16.xpose.msk.msra.mxu0 %vm1061_vm1, %v1060_v43  ;;  %v512_v43 = vld [vmem:[%s1476_s1 + $0x20] sm:$0xff] }
 0x28f   :  { %v1070_v21 = vpack.c.bf16 %v1150_v11, %v1149_v12  ;;  %v1078_v44 = vpack.c.bf16 %v512_v43, %v511_v42  ;;  %v624_v12 = vld [vmem:[%s1477_s2 + $0x30] sm:$0xff] }
 0x290   :  { %v1153_v22 = vpop.permute.xlu0 %1152 }
 0x291   :  { %v1155_v24 = vunpack.i.h.bf16 %v1153_v22  ;;  %v1154_v14 = vunpack.i.l.bf16 %v1153_v22  ;;  %1071 = vmatprep.subr.bf16.mxu1 %v1070_v21  ;;  %v628_v22 = vld [vmem:[%s1477_s2 + $0x50] sm:$0xff] }
 0x292   :  { %1073 = vmatpush3.bf16.msra.mxu1 %v1070_v21  ;;  %v627_v21 = vld [vmem:[%s1477_s2 + $0x48] sm:$0xff] }
 0x293   :  { %v1074_v15 = vpack.c.bf16 %v1155_v24, %v1154_v14  ;;  %v629_v24 = vld [vmem:[%s1477_s2 + $0x58] sm:$0xff] }
 0x294   :  { %v1106_v14 = vpack.c.bf16 %v629_v24, %v628_v22 }
 0x295   :  { %975 = vmatmul.mubr.msk.f32.vlgmr.msra.gmra.mrb[2].mxu0 %vm32_vm0, %v969_v37  ;;  %1075 = vmatprep.subr.bf16.mxu1 %v1074_v15 }
 0x296   :  { %1077 = vmatpush3.bf16.msra.mxu1 %v1074_v15  ;;  %v630_v15 = vld [vmem:[%s1477_s2 + $0x60] sm:$0xff] }
 0x368   :  { %v976_v51 = vpop.f32.mrb[2].mxu0 }
 0x369   :  { %v237_v52 = vpop.f32.mrb[3].mxu0  ;;  %v247_v53 = vmul.f32 0.17677669, %v976_v51  ;;  %v1086_v51 = vpack.c.bf16 %v619_v50, %v618_v49 }
 0x36a   :  { %v246_v54 = vmul.f32 0.17677669, %v237_v52 }
 0x36b   :  { %v263_v57 = vsel %vm261_vm8, %v247_v53, -1e+30  ;;  %1087 = vmatprep.subr.bf16.mxu1 %v1086_v51 }
 0x36c   :  { %v262_v55 = vsel %vm260_vm6, %v246_v54, -1e+30  ;;  %v268_v58 = vsel %vm264_vm7, %v263_v57, -inf }
 0x36d   :  { %v265_v56 = vsel %vm264_vm7, %v262_v55, -inf }
 0x36e   :  { %266 = vmax.xlane.f32.xlu1 %v265_v56 }
 0x372   :  { %269 = vmax.xlane.f32.xlu1 %v268_v58 }
 0x3fb   :  { %v267_v59 = vpop.xlane.xlu1 %266 }
 0x3fc   :  { %v271_v60 = vsub.f32 %v262_v55, %v267_v59  ;;  %v901_v59 = vld [vmem:[%s1478_s3 + $0x2] ss:$0 sm:$0xff] }
 0x3fe   :  { %v273_v63 = vmul.f32 1.442695, %v271_v60 }
 0x3ff   :  { %v270_v61 = vpop.xlane.xlu1 %269 }
 0x400   :  { %v272_v62 = vsub.f32 %v263_v57, %v270_v61  ;;  %v902_v61 = vld [vmem:[%s1478_s3 + $0x3] ss:$0 sm:$0xff] }
 0x402   :  { %v275_v2 = vmul.f32 1.442695, %v272_v62 }
 0x404   :  { %1162 = vpow2.f32 %v275_v2 }
 0x405   :  { %1164 = vpow2.f32 %v273_v63 }
 0x40e   :  { %v1163_v3 = vpop.eup %1162 }
 0x40f   :  { %v280_v4 = vsel %vm264_vm7, %v1163_v3, 0.0  ;;  %v1165_v5 = vpop.eup %1164 }
 0x410   :  { %281 = vadd.xlane.f32.xlu1 %v280_v4  ;;  %v277_v6 = vsel %vm264_vm7, %v1165_v5, 0.0 }
 0x414   :  { %278 = vadd.xlane.f32.xlu1 %v277_v6  ;;  %v620_v6 = vld [vmem:[%s1477_s2 + $0x10] sm:$0xff] }
 0x425   :  { %1142 = vrot.lane.b32.xlu1 %v1141_v39, %s1223_s13 }
 0x49d   :  { %v282_v8 = vpop.xlane.xlu1 %281 }
 0x49e   :  { %1166 = vrcp.f32 %v282_v8  ;;  %v1090_v8 = vpack.c.bf16 %v621_v7, %v620_v6 }
 0x4a1   :  { %v279_v9 = vpop.xlane.xlu1 %278 }
 0x4a2   :  { %1168 = vrcp.f32 %v279_v9  ;;  %v622_v9 = vld [vmem:[%s1477_s2 + $0x20] sm:$0xff] }
 0x4a3   :  { %v1094_v11 = vpack.c.bf16 %v623_v10, %v622_v9 }
 0x4a5   :  { %v1143_v13 = vpop.permute.xlu1 %1142 }
 0x4a6   :  { %v1145_v18 = vunpack.i.h.bf16 %v1143_v13  ;;  %v1144_v20 = vunpack.i.l.bf16 %v1143_v13  ;;  %v625_v13 = vld [vmem:[%s1477_s2 + $0x38] sm:$0xff] }
 0x4a8   :  { %v1066_v23 = vpack.c.bf16 %v1145_v18, %v1144_v20  ;;  %v1167_v16 = vpop.eup %1166  ;;  %v1098_v18 = vpack.c.bf16 %v625_v13, %v624_v12  ;;  %v626_v20 = vld [vmem:[%s1477_s2 + $0x40] sm:$0xff] }
 0x4a9   :  { %v286_v25 = vmul.f32 %v1167_v16, %v1163_v3  ;;  %v631_v16 = vld [vmem:[%s1477_s2 + $0x68] sm:$0xff] }
 0x4aa   :  { %1067 = vmatprep.subr.bf16.mxu0 %v1066_v23 }
 0x4ab   :  { %1069 = vmatpush3.bf16.msra.mxu0 %v1066_v23  ;;  %v1102_v23 = vpack.c.bf16 %v627_v21, %v626_v20 }
 0x4ac   :  { %v1169_v17 = vpop.eup %1168  ;;  %1079 = vmatprep.subr.bf16.mxu0 %v1078_v44 }
 0x4ad   :  { %v285_v19 = vmul.f32 %v1169_v17, %v1165_v5  ;;  %v1110_v17 = vpack.c.bf16 %v631_v16, %v630_v15 }
 0x4af   :  { %981 = vmatprep.mubr.msk.f32.mxu0 %vm264_vm7, %v285_v19  ;;  %v632_v19 = vld [vmem:[%s1477_s2 + $0x70] sm:$0xff] }
 0x4b0   :  { %982 = vmatmul.mubr.msk.f32.vlgmr.msra.gmra.mrb[4].mxu0 %vm264_vm7, %v286_v25  ;;  %v633_v25 = vld [vmem:[%s1477_s2 + $0x78] sm:$0xff] }
 0x4b1   :  { %1081 = vmatpush3.bf16.msra.mxu0 %v1078_v44 }
 0x4b2   :  { %1083 = vmatprep.subr.bf16.mxu0 %v1082_v48 }
 0x4b5   :  { %1085 = vmatpush3.bf16.msra.mxu0 %v1082_v48 }
 0x583   :  { %v983_v26 = vpop.f32.mrb[4].mxu0 }
 0x584   :  { %v365_v27 = vpop.f32.mrb[5].mxu0 }
 0x585   :  { %992 = vmatprep.mubr.msk.f32.mxu1 %vm32_vm0, %v365_v27  ;;  %v717_v27 = vld [vmem:[%s1476_s1 + $0x10] sm:$0xff] }
 0x586   :  { %993 = vmatmul.mubr.msk.f32.vlgmr.msra.gmra.mrb[0].mxu1 %vm32_vm0, %v983_v26  ;;  %v1114_v26 = vpack.c.bf16 %v633_v25, %v632_v19 }
 0x587   :  { %1089 = vmatpush3.bf16.msra.mxu1 %v1086_v51 }
 0x588   :  { %1091 = vmatprep.subr.bf16.mxu1 %v1090_v8 }
 0x58b   :  { %1093 = vmatpush3.bf16.msra.mxu1 %v1090_v8 }
 0x58c   :  { %1095 = vmatprep.subr.bf16.mxu1 %v1094_v11 }
 0x58f   :  { %1097 = vmatpush3.bf16.msra.mxu1 %v1094_v11 }
 0x590   :  { %1099 = vmatprep.subr.bf16.mxu1 %v1098_v18 }
 0x593   :  { %1101 = vmatpush3.bf16.msra.mxu1 %v1098_v18 }
 0x594   :  { %1103 = vmatprep.subr.bf16.mxu1 %v1102_v23 }
 0x597   :  { %1105 = vmatpush3.bf16.msra.mxu1 %v1102_v23 }
 0x598   :  { %1107 = vmatprep.subr.bf16.mxu1 %v1106_v14 }
 0x59b   :  { %1109 = vmatpush3.bf16.msra.mxu1 %v1106_v14 }
 0x59c   :  { %1111 = vmatprep.subr.bf16.mxu1 %v1110_v17 }
 0x59f   :  { %1113 = vmatpush3.bf16.msra.mxu1 %v1110_v17 }
 0x5a0   :  { %1115 = vmatprep.subr.bf16.mxu1 %v1114_v26 }
 0x5a3   :  { %1117 = vmatpush3.bf16.msra.mxu1 %v1114_v26 }
 0x659   :  { %v994_v28 = vpop.f32.mrb[0].mxu1 }
 0x65a   :  { %v1340_v29 = vadd.f32 %v994_v28, %v1273_v1  ;;  %v462_v30 = vpop.f32.mrb[1].mxu1  ;;  %v718_v28 = vld [vmem:[%s1476_s1 + $0x28] sm:$0xff] }
 0x65b   :  { %v1343_v31 = vadd.f32 %v462_v30, %v1268_v0  ;;  %v1118_v30 = vpack.c.bf16 %v718_v28, %v717_v27 }
 0x65c   :  { %v476_v32 = vsel %vm32_vm0, %v1340_v29, 0.0 }
 0x65d   :  { %477 = vadd.xlane.f32.xlu1 %v476_v32  ;;  %v473_v33 = vsel %vm32_vm0, %v1343_v31, 0.0  ;;  %1119 = vmatprep.subr.bf16.mxu0 %v1118_v30  ;;  %v903_v32 = vld [vmem:[%s1478_s3 + $0x5] ss:$0 sm:$0xff] }
 0x65e   :  { %474 = vadd.xlane.f32.xlu0 %v473_v33 }
 0x6ea   :  { %v478_v34 = vpop.xlane.xlu1 %477 }
 0x6eb   :  { %v480_v35 = vmul.f32 0.03125, %v478_v34  ;;  %v475_v36 = vpop.xlane.xlu0 %474 }
 0x6ec   :  { %v479_v37 = vmul.f32 0.03125, %v475_v36 }
 0x6ed   :  { %v482_v38 = vsub.f32 %v1340_v29, %v480_v35 }
 0x6ee   :  { %v481_v1 = vsub.f32 %v1343_v31, %v479_v37 }
 0x6ef   :  { %v484_v40 = vmul.f32 %v482_v38, %v482_v38 }
 0x6f0   :  { %v483_v39 = vmul.f32 %v481_v1, %v481_v1 }
 0x6f1   :  { %v488_v41 = vsel %vm32_vm0, %v484_v40, 0.0 }
 0x6f2   :  { %v485_v0 = vsel %vm32_vm0, %v483_v39, 0.0 }
 0x6f3   :  { %486 = vadd.xlane.f32.xlu0 %v485_v0 }
 0x6f7   :  { %489 = vadd.xlane.f32.xlu0 %v488_v41 }
 0x780   :  { %v487_v52 = vpop.xlane.xlu0 %486 }
 0x781   :  { %v491_v53 = vmul.f32 0.03125, %v487_v52 }
 0x783   :  { %v493_v54 = vadd.f32 1e-05, %v491_v53 }
 0x784   :  { %v490_v55 = vpop.xlane.xlu0 %489 }
 0x785   :  { %1170 = vrsqrt.f32 %v493_v54  ;;  %v492_v56 = vmul.f32 0.03125, %v490_v55  ;;  %v719_v54 = vld [vmem:[%s1476_s1 + $0x40] sm:$0xff]  ;;  %v720_v55 = vld [vmem:[%s1476_s1 + $0x58] sm:$0xff] }
 0x787   :  { %v494_v57 = vadd.f32 1e-05, %v492_v56  ;;  %v1122_v56 = vpack.c.bf16 %v720_v55, %v719_v54 }
 0x789   :  { %1172 = vrsqrt.f32 %v494_v57 }
 0x78f   :  { %v1171_v58 = vpop.eup %1170 }
 0x790   :  { %v497_v60 = vmul.f32 %v1171_v58, %v481_v1  ;;  %v906_v58 = vld [vmem:[%s1478_s3 + $0x4] ss:$0 sm:$0xff] }
 0x792   :  { %v503_v62 = vmul.f32 %v901_v59, %v497_v60 }
 0x793   :  { %v1173_v63 = vpop.eup %1172 }
 0x794   :  { %v498_v2 = vmul.f32 %v1173_v63, %v482_v38  ;;  %v509_v3 = vadd.f32 %v902_v61, %v503_v62 }
 0x796   :  { %v504_v4 = vmul.f32 %v901_v59, %v498_v2  ;;  %1003 = vmatprep.mubr.msk.f32.mxu0 %vm32_vm0, %v509_v3  ;;  %v1225_v2 = vmov 0  }
 0x797   :  { %1157 = vset.pattern.permute.xlu1 %v1225_v2  ;;  %1156 = vset.pattern.permute.xlu0 %v1225_v2 }
 0x798   :  { %v510_v5 = vadd.f32 %v902_v61, %v504_v4 }
 0x79a   :  { %1004 = vmatmul.mubr.msk.f32.vlgmr.msra.gmra.mrb[6].mxu0 %vm32_vm0, %v510_v5 }
 0x79b   :  { %1121 = vmatpush3.bf16.msra.mxu0 %v1118_v30 }
 0x79c   :  { %1123 = vmatprep.subr.bf16.mxu0 %v1122_v56 }
 0x79f   :  { %1125 = vmatpush3.bf16.msra.mxu0 %v1122_v56 }
 0x86d   :  { %v1005_v33 = vpop.f32.mrb[6].mxu0 }
 0x86e   :  { %v597_v34 = vadd.f32 %v1005_v33, %v903_v32  ;;  %v591_v35 = vpop.f32.mrb[7].mxu0 }
 0x86f   :  { %v592_v36 = vadd.f32 %v903_v32, %v591_v35 }
 0x870   :  { %v603_v37 = vmul.f32 0.044715, %v597_v34  ;;  %v601_v51 = vmul.f32 0.5, %v597_v34 }
 0x871   :  { %v602_v38 = vmul.f32 0.044715, %v592_v36  ;;  %v600_v49 = vmul.f32 0.5, %v592_v36 }
 0x872   :  { %v605_v1 = vmul.f32 %v603_v37, %v597_v34 }
 0x873   :  { %v604_v39 = vmul.f32 %v602_v38, %v592_v36 }
 0x874   :  { %v607_v0 = vmul.f32 %v605_v1, %v597_v34 }
 0x875   :  { %v606_v40 = vmul.f32 %v604_v39, %v592_v36 }
 0x876   :  { %v609_v41 = vadd.f32 %v607_v0, %v597_v34 }
 0x877   :  { %v608_v42 = vadd.f32 %v606_v40, %v592_v36 }
 0x878   :  { %v611_v43 = vmul.f32 0.7978846, %v609_v41 }
 0x879   :  { %v610_v44 = vmul.f32 0.7978846, %v608_v42 }
 0x87a   :  { %1174 = vtanh.f32 %v611_v43 }
 0x87b   :  { %1176 = vtanh.f32 %v610_v44 }
 0x884   :  { %v1175_v45 = vpop.eup %1174 }
 0x885   :  { %v1177_v47 = vpop.eup %1176  ;;  %v615_v48 = vadd.f32 1.0, %v1175_v45 }
 0x886   :  { %v614_v50 = vadd.f32 1.0, %v1177_v47 }
 0x887   :  { %v617_v53 = vmul.f32 %v615_v48, %v601_v51 }
 0x888   :  { %v616_v52 = vmul.f32 %v614_v50, %v600_v49 }
 0x88a   :  { %1038 = vmatprep.mubr.f32.mxu1 %v616_v52 }
 0x88b   :  { %1039 = vmatmul.mubr.f32.vlgmr.msra.gmra.mrb[2].mxu1 %v617_v53 }
 0x95e   :  { %v1040_v57 = vpop.f32.mrb[2].mxu1 }
 0x95f   :  { %v710_v59 = vadd.f32 %v1040_v57, %v1340_v29  ;;  %v700_v60 = vpop.f32.mrb[3].mxu1  ;;  %v825_v29 = vld [vmem:[%s1479_s4 + $0x8] sm:$0xff] }
 0x960   :  { %v709_v61 = vadd.f32 %v700_v60, %v1343_v31  ;;  %v824_v31 = vld [vmem:[%s1479_s4] sm:$0xff]  ;;  %s1226_s4 = smov [#allocation2]  }
 0x961   :  { %v716_v63 = vadd.f32 %v906_v58, %v710_v59  ;;  %s865_s22 = sshll.u32 %s1226_s4, 4  ;;  %s866_s22 = int_to_ptr.vmem [resolvable:$true] %s865_s22 }
 0x962   :  { %v715_v62 = vadd.f32 %v906_v58, %v709_v61  ;;  %s1186_s23 = scalar_lea.vmem %s866_s22, 256  ;;  %p1191_p1 = scmp.lt.s32.totalorder %s866_s22, %s866_s22 }
 0x963   :  { %p1187_p0 = scmp.ne.s32.totalorder %s866_s22, %s1186_s23  ;;  %p1192_p2 = scmp.lt.s32.totalorder %s1186_s23, %s1186_s23 }
 0x964   :  { %1049 = vmatprep.mubr.msk.f32.mxu0 %vm32_vm0, %v715_v62 }
 0x965   :  { %1050 = vmatmul.mubr.msk.f32.vlgmr.msra.gmra.mrb[8].mxu0 %vm32_vm0, %v716_v63  ;;  %p1193_p3 = por %p1192_p2, %p1191_p1 }
 0x967   :  { %p1194_p4 = pnand %p1193_p3, %p1187_p0 }
 0xa38   :  { %v1051_v3 = vpop.f32.mrb[8].mxu0 }
 0xa39   :  { %803 = vst [vmem:[#allocation2 + $0x8] sm:$0xff] %v1051_v3  ;;  %806 = vmax.xlane.f32.xlu1 %v1051_v3  ;;  %v793_v4 = vpop.f32.mrb[9].mxu0 }
 0xa3a   :  { %802 = vst [vmem:[#allocation2] sm:$0xff] %v793_v4  ;;  %804 = vmax.xlane.f32.xlu0 %v793_v4 }
 0xa4a   :  { %830 = vperm.xlu1 %1157, %v825_v29  }
 0xa50   :  { %827 = vperm.xlu0 %1156, %v824_v31  }
 0xac6   :  { %v807_v5 = vpop.xlane.xlu1 %806 }
 0xac7   :  { %v809_v6 = vsub.f32 %v1051_v3, %v807_v5  ;;  %v805_v7 = vpop.xlane.xlu0 %804 }
 0xac8   :  { %v808_v8 = vsub.f32 %v793_v4, %v805_v7 }
 0xac9   :  { %v812_v9 = vmul.f32 1.442695, %v809_v6 }
 0xaca   :  { %v810_v10 = vmul.f32 1.442695, %v808_v8  ;;  %v831_v18 = vpop.permute.xlu1 %830 }
 0xacb   :  { %1178 = vpow2.f32 %v812_v9  ;;  %vm833_vm10 = vcmp.eq.s32.totalorder %v1321_v46, %v831_v18 }
 0xacc   :  { %1180 = vpow2.f32 %v810_v10  ;;  %v835_v21 = vsel %vm833_vm10, %v1051_v3, 0.0 }
 0xacf   :  { %v828_v11 = vpop.permute.xlu0 %827 }
 0xad0   :  { %vm832_vm9 = vcmp.eq.s32.totalorder %v1321_v46, %v828_v11 }
 0xad1   :  { %v834_v20 = vsel %vm832_vm9, %v793_v4, 0.0 }
 0xad5   :  { %v1179_v12 = vpop.eup %1178 }
 0xad6   :  { %v1181_v13 = vpop.eup %1180  ;;  %816 = vadd.xlane.f32.xlu0 %v1179_v12 }
 0xad7   :  { %814 = vadd.xlane.f32.xlu1 %v1181_v13 }
 0xadb   :  { %836 = vadd.xlane.f32.xlu1 %v834_v20 }
 0xadf   :  { %838 = vadd.xlane.f32.xlu1 %v835_v21 }
 0xb63   :  { %v817_v22 = vpop.xlane.xlu0 %816 }
 0xb64   :  { %1182 = vlog2.f32 %v817_v22  ;;  %v815_v23 = vpop.xlane.xlu1 %814 }
 0xb65   :  { %1184 = vlog2.f32 %v815_v23 }
 0xb68   :  { %v837_v24 = vpop.xlane.xlu1 %836 }
 0xb6c   :  { %v839_v26 = vpop.xlane.xlu1 %838 }
 0xb6e   :  { %v1183_v14 = vpop.eup %1182 }
 0xb6f   :  { %v1185_v15 = vpop.eup %1184  ;;  %v821_v16 = vmul.f32 0.6931472, %v1183_v14 }
 0xb70   :  { %v819_v17 = vmul.f32 0.6931472, %v1185_v15 }
 0xb71   :  { %v823_v19 = vadd.f32 %v821_v16, %v807_v5 }
 0xb72   :  { %v822_v25 = vadd.f32 %v819_v17, %v805_v7 }
 0xb73   :  { %v841_v27 = vsub.f32 %v823_v19, %v839_v26 }
 0xb74   :  { %v840_v28 = vsub.f32 %v822_v25, %v837_v24 }
 0xb75   :  { %v844_v30 = vsel %vm842_vm11, %v841_v27, 0.0 }
 0xb76   :  { %v843_v46 = vsel %vm842_vm11, %v840_v28, 0.0 }
 0xb77   :  { %v845_v32 = vadd.f32 %v844_v30, %v843_v46 }
 0xb79   :  { %846 = vadd.xlane.f32.xlu1 %v845_v32 }
 0xb7a   :  { %1197 = shalt.err (!%p1194_p4)
}
 0xb7b   :  { %s1198_s25 = scalar_lea.hbm %s1480_s5, 256 }
 0xb7c   :  { %p1199_p5 = scmp.ne.s32.totalorder %s1480_s5, %s1198_s25  ;;  %p1202_p6 = scmp.lt.u32.totalorder %s1198_s25, %s1480_s5 }
 0xb7e   :  { %p1204_p7 = pnand %p1202_p6, %p1199_p5 }
 0xb80   :  { %1207 = shalt.err (!%p1204_p7)
}
 0xb81   :  { %s1227_s30 = smov 128   ;;  %s1228_s7 = smov 8  }
 0xb82   :  { %871 = dma.vmem_to_hbm [thread:$0]  %s866_s22, 256, %s1480_s5, [#allocation3], %s1227_s30, %s1227_s30, %s1228_s7  }
 0xb83   :  { %s1208_s14 = scalar_lea.hbm %s1481_s6, 16 }
 0xb84   :  { %p1209_p8 = scmp.ne.s32.totalorder %s1481_s6, %s1208_s14  ;;  %p1212_p9 = scmp.lt.u32.totalorder %s1208_s14, %s1481_s6 }
 0xb86   :  { %p1214_p10 = pnand %p1212_p9, %p1209_p8 }
 0xc06   :  { %v847_v33 = vpop.xlane.xlu1 %846 }
 0xc07   :  { %v848_v34 = vrot.slane %v847_v33, 4 }
 0xc09   :  { %v849_v35 = vadd.f32 %v848_v34, %v847_v33 }
 0xc0b   :  { %v850_v36 = vrot.slane %v849_v35, 2 }
 0xc0d   :  { %v851_v37 = vadd.f32 %v850_v36, %v849_v35 }
 0xc0f   :  { %v852_v38 = vrot.slane %v851_v37, 1 }
 0xc11   :  { %v853_v1 = vadd.f32 %v852_v38, %v851_v37 }
 0xc13   :  { %1126 = vpush %v853_v1 }
 0xc44   :  { %s1127_s10 = spop %1126 }
 0xc45   :  { %s857_s11 = smul.f32 0.0625, %s1127_s10 }
 0xc47   :  { %859 = sst [smem:[#allocation5]] %s857_s11 }
 0xc48   :  { %1217 = shalt.err (!%p1214_p10)
}
 0xc49   :  { %s1229_s17 = smov [#allocation5]  }
 0xc4a   :  { %879 = dma.smem_to_hbm %s1229_s17, 16, %s1481_s6, [#allocation4]  }
 0xc4b   :  { %1218 = dma.done.wait [#allocation3], 256  }
 0xc4c   :  { %1219 = vsyncadd [#allocation3], 4294967040 }
 0xc4d   :  { %1220 = dma.done.wait [#allocation4], 16  }
 0xc4e   :  { %1221 = vsyncadd [#allocation4], 4294967280 }
 0xc4f   :  { %886 = sfence }
 0xc50   :  { %887 = vsyncpa [#allocation3], 1 }
 0xc51   :  { %888 = vsyncpa [#allocation4], 1 }

</bundles_post_ra>
